<compile_context>
chip_gen: v5e
topology: v5e:2x2
jax: 0.10.0
libtpu: 0.0.40
codegen_flags: <defaults>
</compile_context>

<pallas_src>
import jax
import jax.numpy as jnp
from jax.experimental import pallas as pl
from jax.experimental.pallas import tpu as pltpu


def _round_up(x, m):
    return ((x + m - 1) // m) * m


def _tpu_vmem_capacity_bytes():
    try:
        return int(pltpu.get_tpu_info().vmem_capacity_bytes)
    except Exception:
        return 64 << 20  # conservative fallback (v7x physical VMEM per TC)


def _tpu_num_tensorcores():
    # v7x exposes 2 TensorCores per chip; v5e/v6e have 1. Splitting the M grid
    # for "parallelism" only pays on >= 2 TCs.
    try:
        kind = jax.devices()[0].device_kind.lower()
        if "v7" in kind:
            return 2
    except Exception:
        pass
    return 1


def _resmlp_kernel(x_ref, w_ref, b_ref, o_ref):
    """One (tm, tn) output tile of leaky_relu(x @ W_kn + b, 0.1).

    x_ref: (tm, K)  f32   (cast to bf16 in-kernel; VPU cast hides under MXU/DMA)
    w_ref: (K, tn)  bf16  (MXU-canonical layout -> no per-tile transpose)
    b_ref: (1, tn)  f32
    o_ref: (tm, tn) out dtype
    """
    y = jnp.dot(
        x_ref[...].astype(w_ref.dtype),
        w_ref[...],
        preferred_element_type=jnp.float32,
    )
    y = y + b_ref[...]                               # bias broadcast over rows
    o_ref[...] = jnp.maximum(y, 0.1 * y).astype(o_ref.dtype)   # LeakyReLU(0.1)


def prepare_resmlp_params(weight, bias, compute_dtype=jnp.bfloat16):
    """One-time parameter prep (call once, not per forward).

    weight: (n_feats, n_feats) in PyTorch Linear (out, in) layout.
    Returns:
      w_kn:  (K, N) compute_dtype weight (MXU-canonical).
      b_row: (1, N) f32 bias.
    """
    w_kn = jnp.asarray(weight).T.astype(compute_dtype)
    b_row = jnp.asarray(bias).reshape(1, -1).astype(jnp.float32)
    return w_kn, b_row


def resmlp_forward(x, w_kn, b_row, *, tm_max=512, out_dtype=None):
    """leaky_relu(x @ w_kn + b, 0.1) over the last axis of x.

    Args:
      x:     (..., K) float input (kept in its HBM dtype; cast in-kernel).
      w_kn:  (K, N) bf16 weight from prepare_resmlp_params.
      b_row: (1, N) f32 bias from prepare_resmlp_params.
      out_dtype: output dtype (default: x.dtype, i.e. f32 like the PyTorch op).
    """
    orig_shape = x.shape
    K, N = w_kn.shape
    assert orig_shape[-1] == K, (orig_shape, w_kn.shape)
    if out_dtype is None:
        out_dtype = x.dtype

    x2d = x.reshape(-1, K)            # no pad, no cast: boundary blocks handled
    M = x2d.shape[0]

    in_bytes = jnp.dtype(x2d.dtype).itemsize
    out_bytes = jnp.dtype(out_dtype).itemsize
    w_bytes = jnp.dtype(w_kn.dtype).itemsize

    vmem_cap = _tpu_vmem_capacity_bytes()
    budget = int(vmem_cap * 0.75)
    num_tc = _tpu_num_tensorcores()

    # --- N tiling: keep the full weight VMEM-resident (single-buffered) when it
    # leaves at least half the budget for x/out tiles; otherwise tile N.
    weight_resident = (N * K * w_bytes) <= (budget // 2)
    if weight_resident:
        tn = N
    else:
        tn = (((budget // 2) // (K * w_bytes)) // 128) * 128
        tn = min(N, max(128, tn))

    # --- M tiling: large tiles feed the MXU. Never shrink for "parallelism" on
    # single-TC chips; on 2-TC chips split only if each core keeps >= 256 rows.
    tm = min(tm_max, _round_up(M, 8))
    if num_tc >= 2 and M >= 2 * 256:
        tm = min(tm, max(256, _round_up(pl.cdiv(M, num_tc), 8)))

    def vmem_need(tm_):
        w_bufs = 1 if weight_resident else 2
        return (w_bufs * tn * K * w_bytes          # weight
                + 2 * tn * 4                        # bias (tiny)
                + 2 * tm_ * K * in_bytes            # x tiles (double-buffered)
                + 2 * tm_ * tn * out_bytes)         # out tiles (double-buffered)

    while tm > 8 and vmem_need(tm) > budget:
        tm = max(8, _round_up(tm // 2, 8))

    grid_m = pl.cdiv(M, tm)
    grid_n = pl.cdiv(N, tn)

    need = vmem_need(tm)
    vmem_limit = int(min(budget, max(need + need // 4 + (2 << 20), 16 << 20)))

    if weight_resident:
        # Constant index_map -> single buffer, DMA'd once, stays resident.
        w_spec = pl.BlockSpec((K, tn), lambda i, j: (0, 0),
                              pipeline_mode=pl.Buffered(1))
        b_spec = pl.BlockSpec((1, tn), lambda i, j: (0, 0),
                              pipeline_mode=pl.Buffered(1))
    else:
        w_spec = pl.BlockSpec((K, tn), lambda i, j: (0, j))
        b_spec = pl.BlockSpec((1, tn), lambda i, j: (0, j))

    out2d = pl.pallas_call(
        _resmlp_kernel,
        out_shape=jax.ShapeDtypeStruct((M, N), out_dtype),
        grid_spec=pltpu.PrefetchScalarGridSpec(
            num_scalar_prefetch=0,
            grid=(grid_m, grid_n),
            in_specs=[
                pl.BlockSpec((tm, K), lambda i, j: (i, 0)),  # x rows (streamed)
                w_spec,                                      # weight
                b_spec,                                      # bias
            ],
            out_specs=pl.BlockSpec((tm, tn), lambda i, j: (i, j)),
        ),
        compiler_params=pltpu.CompilerParams(
            dimension_semantics=("parallel", "parallel"),
            vmem_limit_bytes=vmem_limit,
        ),
    )(x2d, w_kn, b_row)

    return out2d.reshape(orig_shape[:-1] + (N,))


def resmlp_apply(x, weight, bias, **kwargs):
    """Convenience: accepts PyTorch-layout (out, in) params; prep happens per call."""
    w_kn, b_row = prepare_resmlp_params(weight, bias)
    return resmlp_forward(x, w_kn, b_row, **kwargs)


def _reference(x, weight, bias):
    y = jnp.einsum("...k,nk->...n", x, weight) + bias
    return jnp.where(y >= 0, y, 0.1 * y)


if __name__ == "__main__":
    # Small, tile-friendly shapes consistent with the module (Linear on last dim).
    n_feats = 256
    batch, seq = 2, 8                              # x: (2, 8, 256)

    key = jax.random.PRNGKey(0)
    kx, kw, kb = jax.random.split(key, 3)
    x = jax.random.normal(kx, (batch, seq, n_feats), dtype=jnp.float32)
    # Deterministic synthetic Linear params (PyTorch (out, in) layout).
    weight = jax.random.normal(kw, (n_feats, n_feats), dtype=jnp.float32) * 0.02
    bias = jax.random.normal(kb, (n_feats,), dtype=jnp.float32) * 0.02

    # One-time param prep (transpose to (K, N) + bf16 cast), then forward.
    w_kn, b_row = prepare_resmlp_params(weight, bias)
    out = resmlp_forward(x, w_kn, b_row)
    out = jax.block_until_ready(out)

    ref_f32 = _reference(x, weight, bias)
    ref_bf16 = _reference(
        x.astype(jnp.bfloat16).astype(jnp.float32),
        weight.astype(jnp.bfloat16).astype(jnp.float32),
        bias,
    )
    assert out.shape == ref_f32.shape
    # Tight check vs. matched-precision reference, loose check vs. f32 reference
    # (MXU operands are bf16 with f32 accumulation).
    assert jnp.allclose(out, ref_bf16, atol=1e-4, rtol=1e-3), "mismatch vs bf16 reference"
    assert jnp.allclose(out, ref_f32, atol=2e-2, rtol=2e-2), "mismatch vs f32 reference"

    print("KERNEL_OK")
</pallas_src>

<mosaic_0001>
module attributes {stable_mosaic.version = 11 : i64} {
  func.func @_resmlp_kernel(%arg0: i32, %arg1: i32, %arg2: memref<16x256xf32, #tpu.memory_space<vmem>>, %arg3: memref<256x256xbf16, #tpu.memory_space<vmem>>, %arg4: memref<1x256xf32, #tpu.memory_space<vmem>>, %arg5: memref<16x256xf32, #tpu.memory_space<vmem>>) attributes {dimension_semantics = [#tpu.dimension_semantics<parallel>, #tpu.dimension_semantics<parallel>], iteration_bounds = array<i64: 1, 1>, scalar_prefetch = 0 : i64, scratch_operands = 0 : i64, tpu.core_type = #tpu.core_type<tc>, window_params = [{transform_indices = @transform_0, window_bounds = array<i64: 16, 256>}, {pipeline_mode = #tpu.pipeline_mode<synchronous>, transform_indices = @transform_1, window_bounds = array<i64: 256, 256>}, {pipeline_mode = #tpu.pipeline_mode<synchronous>, transform_indices = @transform_2, window_bounds = array<i64: 1, 256>}, {transform_indices = @transform_3, window_bounds = array<i64: 16, 256>}]} {
    %c0 = arith.constant 0 : index
    %c0_0 = arith.constant 0 : index
    %0 = vector.load %arg2[%c0, %c0_0] : memref<16x256xf32, #tpu.memory_space<vmem>>, vector<16x256xf32>
    %1 = arith.truncf %0 : vector<16x256xf32> to vector<16x256xbf16>
    %c0_1 = arith.constant 0 : index
    %c0_2 = arith.constant 0 : index
    %2 = vector.load %arg3[%c0_1, %c0_2] : memref<256x256xbf16, #tpu.memory_space<vmem>>, vector<256x256xbf16>
    %cst = arith.constant dense<0.000000e+00> : vector<16x256xf32>
    %3 = tpu.matmul %1, %2, %cst {dimension_numbers = #tpu.dot_dimension_numbers<[1], [0], [0], [1], [0, 0, 1, 1], [], []>} : vector<16x256xbf16>, vector<256x256xbf16>, vector<16x256xf32> -> vector<16x256xf32>
    %c0_3 = arith.constant 0 : index
    %c0_4 = arith.constant 0 : index
    %4 = vector.load %arg4[%c0_3, %c0_4] : memref<1x256xf32, #tpu.memory_space<vmem>>, vector<1x256xf32>
    %5 = vector.broadcast %4 : vector<1x256xf32> to vector<16x256xf32>
    %6 = arith.addf %3, %5 : vector<16x256xf32>
    %cst_5 = arith.constant 1.000000e-01 : f32
    %7 = vector.broadcast %cst_5 : f32 to vector<16x256xf32>
    %8 = arith.mulf %7, %6 : vector<16x256xf32>
    %9 = arith.maximumf %6, %8 : vector<16x256xf32>
    %c0_6 = arith.constant 0 : index
    %c0_7 = arith.constant 0 : index
    %10 = vector.load %arg5[%c0_6, %c0_7] : memref<16x256xf32, #tpu.memory_space<vmem>>, vector<16x256xf32>
    tpu.vector_store %arg5[%c0_6, %c0_7], %9 {strides = array<i32>} : memref<16x256xf32, #tpu.memory_space<vmem>>, vector<16x256xf32>,
    return
  }
  func.func @transform_0(%arg0: i32, %arg1: i32) -> (i32, i32) {
    %c0_i32 = arith.constant 0 : i32
    %c0_i32_0 = arith.constant 0 : i32
    return %arg0, %c0_i32 : i32, i32
  }
  func.func @transform_1(%arg0: i32, %arg1: i32) -> (i32, i32) {
    %c0_i32 = arith.constant 0 : i32
    %c0_i32_0 = arith.constant 0 : i32
    %c0_i32_1 = arith.constant 0 : i32
    return %c0_i32, %c0_i32_0 : i32, i32
  }
  func.func @transform_2(%arg0: i32, %arg1: i32) -> (i32, i32) {
    %c0_i32 = arith.constant 0 : i32
    %c0_i32_0 = arith.constant 0 : i32
    %c0_i32_1 = arith.constant 0 : i32
    return %c0_i32, %c0_i32_0 : i32, i32
  }
  func.func @transform_3(%arg0: i32, %arg1: i32) -> (i32, i32) {
    %c0_i32 = arith.constant 0 : i32
    return %arg0, %arg1 : i32, i32
  }
}

</mosaic_0001>

<bundles_post_ra>
// kernel: tpu_custom_call.1
= control target key start
LH: loop header
LB: loop body
LE: loop exit
PB: predicated region body
PF: predicated region fallthrough
CT: control target
= control target key end

     0   :  { %8 = vsyncpa [#allocation3], 0  ;;  %s668_s0 = inlined_call_operand.hbm [shape: f32[16,256], index: 0, kind: input, shape index: {}]   ;;  %s669_s1 = inlined_call_operand.hbm [shape: bf16[256,256], index: 1, kind: input, shape index: {}]   ;;  %s670_s2 = inlined_call_operand.hbm [shape: f32[1,256], index: 2, kind: input, shape index: {}]   ;;  %s671_s3 = inlined_call_operand.hbm [shape: f32[16,256], index: 3, kind: output, shape index: {}]  }
   0x1   :  { %9 = vsyncpa [#allocation6], 0  ;;  %s28_s14 = sshll.u32 %s669_s1, 4  ;;  %s29_s14 = int_to_ptr.hbm [resolvable:$true] %s28_s14 }
   0x2   :  { %10 = vsyncpa [#allocation4], 0  ;;  %s622_s15 = smov [#allocation5]   ;;  %s15_s19 = sshll.u32 %s668_s0, 4  ;;  %s16_s19 = int_to_ptr.hbm [resolvable:$true] %s15_s19 }
   0x3   :  { %s30_s16 = sshll.u32 %s622_s15, 4  ;;  %s623_s20 = smov 128   ;;  %s31_s16 = int_to_ptr.vmem [resolvable:$true] %s30_s16 }
   0x4   :  { %s624_s21 = smov 8   ;;  %s625_s22 = smov [#allocation2]  }
   0x5   :  { %36 = dma.hbm_to_vmem [thread:$0]  %s29_s14, 4096, %s31_s16, [#allocation6], %s623_s20, %s623_s20, %s624_s21  }
   0x6   :  { %s17_s23 = sshll.u32 %s625_s22, 4  ;;  %s626_s24 = smov 256   ;;  %s18_s23 = int_to_ptr.vmem [resolvable:$true] %s17_s23 }
   0x7   :  { %s627_s25 = smov 16   ;;  %s42_s27 = sshll.u32 %s670_s2, 4  ;;  %s43_s27 = int_to_ptr.hbm [resolvable:$true] %s42_s27 }
   0x8   :  { %23 = dma.hbm_to_vmem [thread:$0]  %s16_s19, 512, %s18_s23, [#allocation3], %s626_s24, %s626_s24, %s627_s25  }
   0x9   :  { %s628_s28 = smov [#allocation7]  }
   0xa   :  { %s44_s0 = sshll.u32 %s628_s28, 4  ;;  %s45_s0 = int_to_ptr.vmem [resolvable:$true] %s44_s0 }
   0xb   :  { %47 = dma.hbm_to_vmem [thread:$0]  %s43_s27, 32, %s45_s0, [#allocation6]  }
   0xc   :  { %616 = dma.done.wait [#allocation3], 512  }
   0xd   :  { %617 = vsyncadd [#allocation3], 4294966784 }
   0xe   :  { %618 = dma.done.wait [#allocation6], 4128  }
   0xf   :  { %619 = vsyncadd [#allocation6], 4294963168  ;;  %v410_v0 = vld [vmem:[#allocation5 + $0x70] sm:$0xf]  ;;  %v495_v1 = vld [vmem:[#allocation5 + $0x74] sm:$0xf0] }
  0x10   :  { %v474_v2 = vld [vmem:[#allocation5 + $0xf0] sm:$0xf]  ;;  %v411_v3 = vor.u32 %v495_v1, %v410_v0  ;;  %v511_v4 = vld [vmem:[#allocation5 + $0xf4] sm:$0xf0]  ;;  %v494_v5 = vld [vmem:[#allocation5 + $0x74] sm:$0xf] }
  0x11   :  { %v412_v6 = vld [vmem:[#allocation5 + $0x78] sm:$0xf0]  ;;  %v475_v7 = vor.u32 %v511_v4, %v474_v2  ;;  %v510_v9 = vld [vmem:[#allocation5 + $0xf4] sm:$0xf]  ;;  %v402_v11 = vld [vmem:[#allocation5 + $0x60] sm:$0xf] }
  0x12   :  { %v415_v8 = vor.u32 %v494_v5, %v412_v6  ;;  %v476_v10 = vld [vmem:[#allocation5 + $0xf8] sm:$0xf0]  ;;  %264 = vmatpush.bf16.msra.mxu0 %v411_v3  ;;  %v493_v13 = vld [vmem:[#allocation5 + $0x64] sm:$0xf0]  ;;  %v466_v14 = vld [vmem:[#allocation5 + $0xe0] sm:$0xf] }
  0x13   :  { %v479_v12 = vor.u32 %v510_v9, %v476_v10  ;;  %v509_v15 = vld [vmem:[#allocation5 + $0xe4] sm:$0xf0]  ;;  %278 = vmatpush.bf16.msra.mxu1 %v475_v7  ;;  %v403_v16 = vor.u32 %v493_v13, %v402_v11  ;;  %v492_v18 = vld [vmem:[#allocation5 + $0x64] sm:$0xf]  ;;  %v404_v19 = vld [vmem:[#allocation5 + $0x68] sm:$0xf0] }
  0x14   :  { %292 = vmatpush.bf16.msra.mxu2 %v415_v8  ;;  %v467_v17 = vor.u32 %v509_v15, %v466_v14  ;;  %v508_v20 = vld [vmem:[#allocation5 + $0xe4] sm:$0xf]  ;;  %v407_v21 = vor.u32 %v492_v18, %v404_v19  ;;  %v468_v22 = vld [vmem:[#allocation5 + $0xe8] sm:$0xf0]  ;;  %v394_v23 = vld [vmem:[#allocation5 + $0x50] sm:$0xf] }
  0x15   :  { %306 = vmatpush.bf16.msra.mxu3 %v479_v12  ;;  %v491_v24 = vld [vmem:[#allocation5 + $0x54] sm:$0xf0]  ;;  %v471_v25 = vor.u32 %v508_v20, %v468_v22  ;;  %v458_v26 = vld [vmem:[#allocation5 + $0xd0] sm:$0xf]  ;;  %v490_v28 = vld [vmem:[#allocation5 + $0x54] sm:$0xf] }
  0x16   :  { %v507_v27 = vld [vmem:[#allocation5 + $0xd4] sm:$0xf0]  ;;  %265 = vmatpush.bf16.msra.mxu0 %v403_v16  ;;  %v395_v29 = vor.u32 %v491_v24, %v394_v23  ;;  %v396_v30 = vld [vmem:[#allocation5 + $0x58] sm:$0xf0]  ;;  %v506_v31 = vld [vmem:[#allocation5 + $0xd4] sm:$0xf] }
  0x17   :  { %v460_v32 = vld [vmem:[#allocation5 + $0xd8] sm:$0xf0]  ;;  %279 = vmatpush.bf16.msra.mxu1 %v467_v17  ;;  %v459_v33 = vor.u32 %v507_v27, %v458_v26  ;;  %v399_v34 = vor.u32 %v490_v28, %v396_v30  ;;  %v386_v35 = vld [vmem:[#allocation5 + $0x40] sm:$0xf]  ;;  %v489_v36 = vld [vmem:[#allocation5 + $0x44] sm:$0xf0] }
  0x18   :  { %293 = vmatpush.bf16.msra.mxu2 %v407_v21  ;;  %v450_v37 = vld [vmem:[#allocation5 + $0xc0] sm:$0xf]  ;;  %v463_v38 = vor.u32 %v506_v31, %v460_v32  ;;  %v505_v39 = vld [vmem:[#allocation5 + $0xc4] sm:$0xf0]  ;;  %v488_v40 = vld [vmem:[#allocation5 + $0x44] sm:$0xf]  ;;  %v387_v44 = vor.u32 %v489_v36, %v386_v35 }
  0x19   :  { %307 = vmatpush.bf16.msra.mxu3 %v471_v25  ;;  %v388_v41 = vld [vmem:[#allocation5 + $0x48] sm:$0xf0]  ;;  %v504_v42 = vld [vmem:[#allocation5 + $0xc4] sm:$0xf]  ;;  %v451_v45 = vor.u32 %v505_v39, %v450_v37  ;;  %v378_v47 = vld [vmem:[#allocation5 + $0x30] sm:$0xf] }
  0x1a   :  { %v452_v43 = vld [vmem:[#allocation5 + $0xc8] sm:$0xf0]  ;;  %266 = vmatpush.bf16.msra.mxu0 %v395_v29  ;;  %v391_v46 = vor.u32 %v488_v40, %v388_v41  ;;  %v487_v48 = vld [vmem:[#allocation5 + $0x34] sm:$0xf0]  ;;  %v442_v49 = vld [vmem:[#allocation5 + $0xb0] sm:$0xf] }
  0x1b   :  { %280 = vmatpush.bf16.msra.mxu1 %v459_v33  ;;  %v455_v50 = vor.u32 %v504_v42, %v452_v43  ;;  %v503_v51 = vld [vmem:[#allocation5 + $0xb4] sm:$0xf0]  ;;  %v486_v52 = vld [vmem:[#allocation5 + $0x34] sm:$0xf]  ;;  %v380_v53 = vld [vmem:[#allocation5 + $0x38] sm:$0xf0]  ;;  %v379_v56 = vor.u32 %v487_v48, %v378_v47 }
  0x1c   :  { %294 = vmatpush.bf16.msra.mxu2 %v399_v34  ;;  %v502_v54 = vld [vmem:[#allocation5 + $0xb4] sm:$0xf]  ;;  %v444_v55 = vld [vmem:[#allocation5 + $0xb8] sm:$0xf0]  ;;  %v443_v57 = vor.u32 %v503_v51, %v442_v49  ;;  %v383_v58 = vor.u32 %v486_v52, %v380_v53  ;;  %v370_v59 = vld [vmem:[#allocation5 + $0x20] sm:$0xf] }
  0x1d   :  { %308 = vmatpush.bf16.msra.mxu3 %v463_v38  ;;  %v485_v60 = vld [vmem:[#allocation5 + $0x24] sm:$0xf0]  ;;  %v434_v61 = vld [vmem:[#allocation5 + $0xa0] sm:$0xf]  ;;  %v447_v62 = vor.u32 %v502_v54, %v444_v55  ;;  %v484_v0 = vld [vmem:[#allocation5 + $0x24] sm:$0xf] }
  0x1e   :  { %267 = vmatpush.bf16.msra.mxu0 %v387_v44  ;;  %v501_v63 = vld [vmem:[#allocation5 + $0xa4] sm:$0xf0]  ;;  %v372_v1 = vld [vmem:[#allocation5 + $0x28] sm:$0xf0]  ;;  %v500_v2 = vld [vmem:[#allocation5 + $0xa4] sm:$0xf]  ;;  %v371_v4 = vor.u32 %v485_v60, %v370_v59 }
  0x1f   :  { %281 = vmatpush.bf16.msra.mxu1 %v451_v45  ;;  %v436_v3 = vld [vmem:[#allocation5 + $0xa8] sm:$0xf0]  ;;  %v435_v5 = vor.u32 %v501_v63, %v434_v61  ;;  %v375_v6 = vor.u32 %v484_v0, %v372_v1  ;;  %v362_v7 = vld [vmem:[#allocation5 + $0x10] sm:$0xf]  ;;  %v483_v8 = vld [vmem:[#allocation5 + $0x14] sm:$0xf0] }
  0x20   :  { %295 = vmatpush.bf16.msra.mxu2 %v391_v46  ;;  %v426_v9 = vld [vmem:[#allocation5 + $0x90] sm:$0xf]  ;;  %v439_v10 = vor.u32 %v500_v2, %v436_v3  ;;  %v499_v11 = vld [vmem:[#allocation5 + $0x94] sm:$0xf0]  ;;  %v482_v12 = vld [vmem:[#allocation5 + $0x14] sm:$0xf]  ;;  %v363_v16 = vor.u32 %v483_v8, %v362_v7 }
  0x21   :  { %309 = vmatpush.bf16.msra.mxu3 %v455_v50  ;;  %v364_v13 = vld [vmem:[#allocation5 + $0x18] sm:$0xf0]  ;;  %v498_v14 = vld [vmem:[#allocation5 + $0x94] sm:$0xf]  ;;  %v427_v17 = vor.u32 %v499_v11, %v426_v9  ;;  %v354_v19 = vld [vmem:[#allocation5] sm:$0xf] }
  0x22   :  { %268 = vmatpush.bf16.msra.mxu0 %v379_v56  ;;  %v428_v15 = vld [vmem:[#allocation5 + $0x98] sm:$0xf0]  ;;  %v367_v18 = vor.u32 %v482_v12, %v364_v13  ;;  %v481_v20 = vld [vmem:[#allocation5 + $0x4] sm:$0xf0]  ;;  %v418_v21 = vld [vmem:[#allocation5 + $0x80] sm:$0xf] }
  0x23   :  { %282 = vmatpush.bf16.msra.mxu1 %v443_v57  ;;  %v431_v22 = vor.u32 %v498_v14, %v428_v15  ;;  %v497_v23 = vld [vmem:[#allocation5 + $0x84] sm:$0xf0]  ;;  %v480_v24 = vld [vmem:[#allocation5 + $0x4] sm:$0xf]  ;;  %v356_v25 = vld [vmem:[#allocation5 + $0x8] sm:$0xf0]  ;;  %v355_v28 = vor.u32 %v481_v20, %v354_v19 }
  0x24   :  { %296 = vmatpush.bf16.msra.mxu2 %v383_v58  ;;  %v496_v26 = vld [vmem:[#allocation5 + $0x84] sm:$0xf]  ;;  %v420_v27 = vld [vmem:[#allocation5 + $0x88] sm:$0xf0]  ;;  %v62_v30 = vld [vmem:[#allocation2 + $0x10] sm:$0xff]  ;;  %v419_v31 = vor.u32 %v497_v23, %v418_v21  ;;  %v359_v32 = vor.u32 %v480_v24, %v356_v25  ;;  %s629_s2 = smov [#allocation8]  }
  0x25   :  { %310 = vmatpush.bf16.msra.mxu3 %v447_v62  ;;  %v60_v29 = vld [vmem:[#allocation2] sm:$0xff]  ;;  %v61_v33 = vld [vmem:[#allocation2 + $0x8] sm:$0xff]  ;;  %v63_v34 = vld [vmem:[#allocation2 + $0x18] sm:$0xff]  ;;  %v423_v35 = vor.u32 %v496_v26, %v420_v27  ;;  %s336_s29 = sshll.u32 %s629_s2, 4  ;;  %s338_s5 = sshll.u32 %s671_s3, 4  ;;  %s337_s29 = int_to_ptr.vmem [resolvable:$true] %s336_s29  ;;  %s339_s5 = int_to_ptr.hbm [resolvable:$true] %s338_s5 }
  0x26   :  { %269 = vmatpush.bf16.msra.mxu0 %v371_v4  ;;  %v64_v36 = vpack.c.bf16 %v62_v30, %v60_v29  ;;  %v65_v37 = vpack.c.bf16 %v63_v34, %v61_v33  ;;  %v98_v38 = vld [vmem:[#allocation7] sm:$0x3] }
  0x27   :  { %283 = vmatpush.bf16.msra.mxu1 %v435_v5  ;;  %v100_v39 = vperm.slane %v98_v38, 0  ;;  %v101_v44 = vperm.slane %v98_v38, 1 }
  0x28   :  { %297 = vmatpush.bf16.msra.mxu2 %v375_v6 }
  0x29   :  { %311 = vmatpush.bf16.msra.mxu3 %v439_v10 }
  0x2a   :  { %270 = vmatpush.bf16.msra.mxu0 %v363_v16 }
  0x2b   :  { %284 = vmatpush.bf16.msra.mxu1 %v427_v17 }
  0x2c   :  { %298 = vmatpush.bf16.msra.mxu2 %v367_v18 }
  0x2d   :  { %312 = vmatpush.bf16.msra.mxu3 %v431_v22 }
  0x2e   :  { %271 = vmatpush.bf16.msra.mxu0 %v355_v28 }
  0x2f   :  { %285 = vmatpush.bf16.msra.mxu1 %v419_v31 }
  0x30   :  { %299 = vmatpush.bf16.msra.mxu2 %v359_v32 }
  0x31   :  { %313 = vmatpush.bf16.msra.mxu3 %v423_v35  ;;  %272 = vmatmul.bf16.vlgmr.msra.gmra.mxu0 %v64_v36 }
  0x32   :  { %286 = vmatmul.bf16.vlgmr.msra.gmra.mxu1 %v65_v37 }
  0x33   :  { %300 = vmatmul.bf16.vlgmr.msra.gmra.mxu2 %v64_v36 }
  0x34   :  { %314 = vmatmul.bf16.vlgmr.msra.gmra.mxu3 %v65_v37 }
  0xae   :  { %v273_v40 = vpop.f32.mrf.mxu0 }
  0xaf   :  { %v274_v41 = vadd.f32 %v273_v40, %v100_v39  ;;  %v287_v42 = vpop.f32.mrf.mxu1 }
  0xb1   :  { %v288_v43 = vadd.f32 %v287_v42, %v274_v41 }
  0xb3   :  { %v320_v45 = vmul.f32 0.1, %v288_v43 }
  0xb5   :  { %v324_v46 = vmax.f32 %v288_v43, %v320_v45 }
  0xb6   :  { %v301_v47 = vpop.f32.mrf.mxu2  ;;  %v275_v50 = vpop.f32.mrf.mxu0 }
  0xb7   :  { %v302_v48 = vadd.f32 %v301_v47, %v101_v44  ;;  %v315_v49 = vpop.f32.mrf.mxu3  ;;  %328 = vst [vmem:[#allocation8] sm:$0xff] %v324_v46  ;;  %v276_v51 = vadd.f32 %v275_v50, %v100_v39  ;;  %v289_v53 = vpop.f32.mrf.mxu1 }
  0xb9   :  { %v316_v52 = vadd.f32 %v315_v49, %v302_v48  ;;  %v290_v54 = vadd.f32 %v289_v53, %v276_v51 }
  0xbb   :  { %v321_v55 = vmul.f32 0.1, %v316_v52  ;;  %v322_v56 = vmul.f32 0.1, %v290_v54 }
  0xbd   :  { %v325_v57 = vmax.f32 %v316_v52, %v321_v55  ;;  %v326_v58 = vmax.f32 %v290_v54, %v322_v56 }
  0xbe   :  { %v303_v59 = vpop.f32.mrf.mxu2 }
  0xbf   :  { %329 = vst [vmem:[#allocation8 + $0x8] sm:$0xff] %v325_v57  ;;  %v304_v60 = vadd.f32 %v303_v59, %v101_v44  ;;  %v317_v61 = vpop.f32.mrf.mxu3 }
  0xc0   :  { %330 = vst [vmem:[#allocation8 + $0x10] sm:$0xff] %v326_v58 }
  0xc1   :  { %v318_v62 = vadd.f32 %v317_v61, %v304_v60 }
  0xc3   :  { %v323_v63 = vmul.f32 0.1, %v318_v62 }
  0xc5   :  { %v327_v0 = vmax.f32 %v318_v62, %v323_v63 }
  0xc7   :  { %331 = vst [vmem:[#allocation8 + $0x18] sm:$0xff] %v327_v0 }
  0xc8   :  { %344 = dma.vmem_to_hbm [thread:$0]  %s337_s29, 512, %s339_s5, [#allocation4], %s626_s24, %s626_s24, %s627_s25  }
  0xc9   :  { %620 = dma.done.wait [#allocation4], 512  }
  0xca   :  { %621 = vsyncadd [#allocation4], 4294966784 }
  0xcb   :  { %349 = vsyncpa [#allocation3], 1 }
  0xcc   :  { %350 = vsyncpa [#allocation6], 1 }
  0xcd   :  { %351 = vsyncpa [#allocation4], 1 }

</bundles_post_ra>
